<compile_context>
chip_gen: v6e
topology: v6e:2x2x1
jax: 0.10.0
libtpu: 0.0.40
codegen_flags: <defaults>
</compile_context>

<pallas_src>
import functools

import numpy as np
import jax
import jax.numpy as jnp
from jax import lax
from jax.experimental import pallas as pl
from jax.experimental.pallas import tpu as pltpu


def _resblock_kernel(x_ref, wcat_ref, bcat_ref, w1_ref, b1_ref,
                     w2_ref, b2_ref, mask_ref, out_ref, *,
                     outc, W, compute_dtype):
    f32 = jnp.float32
    x = x_ref[0]                                    # (inc, BP) compute_dtype
    BP = x.shape[1]

    # Fused skip (1x1) + conv_res_0 (1x1): one matmul over the shared RHS x.
    y = jnp.dot(wcat_ref[...], x, preferred_element_type=f32) + bcat_ref[...]
    y = jnp.maximum(y, 0.0)                         # (outc+midc, BP) f32
    skip = y[:outc]                                 # (outc, BP)
    r0 = y[outc:]                                   # (midc, BP)

    # conv_res_1 (3x3, padding=1): stack the 9 rolled+masked taps along the
    # sublane axis -> single matmul with contraction dim 9*midc.
    taps = []
    for kh in range(3):
        for kw in range(3):
            t = kh * 3 + kw
            off = (kh - 1) * W + (kw - 1)
            if off == 0:
                shifted = r0
            else:
                # shifted[:, p] = r0[:, (p + off) % BP]; wrapped taps
                # (image/padding boundaries) are zeroed by the mask.
                shifted = pltpu.roll(r0, shift=(-off) % BP, axis=1)
            taps.append(shifted * mask_ref[t])      # (midc, BP) f32
    stacked = jnp.concatenate(taps, axis=0).astype(compute_dtype)  # (9*midc, BP)

    r1 = jnp.maximum(
        jnp.dot(w1_ref[...], stacked, preferred_element_type=f32)
        + b1_ref[...], 0.0)                         # (midc, BP) f32

    # conv_res_2 (1x1)
    r2 = jnp.maximum(
        jnp.dot(w2_ref[...], r1.astype(compute_dtype),
                preferred_element_type=f32)
        + b2_ref[...], 0.0)                         # (outc, BP) f32

    out_ref[0] = (skip + r2).astype(out_ref.dtype)


def _pick_batch_tile(N, inc, midc, outc, Ppad,
                     budget_bytes=6 * 1024 * 1024, max_lanes=65536):
    """Largest divisor B of N whose per-step live VMEM stays well under budget."""
    per_image = (2 * inc * 2            # x block, bf16, double-buffered
                 + 2 * outc * 4         # out block, f32, double-buffered
                 + (outc + midc) * 4    # fused skip/r0
                 + 9 * midc * 4         # f32 taps
                 + 9 * midc * 2         # bf16 stacked
                 + 2 * midc * 4         # r1 (f32 + bf16 copy)
                 + outc * 4             # r2
                 + 9 * 4) * Ppad        # masks
    B = 1
    for cand in range(1, N + 1):
        if (N % cand == 0 and cand * per_image <= budget_bytes
                and cand * Ppad <= max_lanes):
            B = cand
    return B


def _boundary_masks(H, W, P, Ppad, B):
    """(9, 1, B*Ppad) f32 masks: 1 where the 3x3 tap is in-bounds, else 0."""
    p = np.arange(Ppad)
    h = p // W
    w = p % W
    masks = []
    for kh in range(3):
        for kw in range(3):
            dh, dw = kh - 1, kw - 1
            valid = ((p < P) & (h + dh >= 0) & (h + dh < H)
                     & (w + dw >= 0) & (w + dw < W))
            masks.append(valid)
    mask = np.stack(masks, axis=0).astype(np.float32)   # (9, Ppad)
    mask = np.tile(mask, (1, B)).reshape(9, 1, B * Ppad)
    return jnp.asarray(mask)


def resblock_pallas(x, params, compute_dtype=jnp.bfloat16):
    """x: (N, inc, H, W) float32; params: tuple of weights/biases (PyTorch layout)."""
    wskip, bskip, w0, b0, w1, b1, w2, b2 = params
    N, inc, H, W = x.shape
    outc = wskip.shape[0]
    midc = w0.shape[0]
    P = H * W
    Ppad = 128 * pl.cdiv(P, 128)

    x_flat = x.reshape(N, inc, P).astype(jnp.float32)
    if Ppad != P:
        x_flat = jnp.pad(x_flat, ((0, 0), (0, 0), (0, Ppad - P)))

    B = _pick_batch_tile(N, inc, midc, outc, Ppad)
    G = N // B
    BP = B * Ppad

    # (N, inc, Ppad) -> (G, inc, B*Ppad): B images contiguous on the lane axis.
    x_g = (x_flat.reshape(G, B, inc, Ppad)
           .transpose(0, 2, 1, 3)
           .reshape(G, inc, BP)).astype(compute_dtype)

    mask = _boundary_masks(H, W, P, Ppad, B)                       # (9, 1, BP)

    # Fused skip + conv_res_0 weights/biases.
    wcat = jnp.concatenate([wskip, w0], axis=0).astype(compute_dtype)  # (outc+midc, inc)
    bcat = jnp.concatenate([bskip, b0], axis=0).reshape(-1, 1).astype(jnp.float32)
    # (O, I, 3, 3) -> (O, 9*I) with tap-major columns (kh*3+kw)*I + i.
    w1_flat = (jnp.transpose(w1, (0, 2, 3, 1))
               .reshape(midc, 9 * midc).astype(compute_dtype))
    b1c = b1.reshape(-1, 1).astype(jnp.float32)
    w2c = w2.astype(compute_dtype)
    b2c = b2.reshape(-1, 1).astype(jnp.float32)

    kernel = functools.partial(_resblock_kernel, outc=outc, W=W,
                               compute_dtype=compute_dtype)

    grid_spec = pltpu.PrefetchScalarGridSpec(
        num_scalar_prefetch=0,
        grid=(G,),
        in_specs=[
            pl.BlockSpec((1, inc, BP), lambda g: (g, 0, 0)),            # x
            pl.BlockSpec((outc + midc, inc), lambda g: (0, 0)),         # wcat
            pl.BlockSpec((outc + midc, 1), lambda g: (0, 0)),           # bcat
            pl.BlockSpec((midc, 9 * midc), lambda g: (0, 0)),           # w1 flat
            pl.BlockSpec((midc, 1), lambda g: (0, 0)),                  # b1
            pl.BlockSpec((outc, midc), lambda g: (0, 0)),               # w2
            pl.BlockSpec((outc, 1), lambda g: (0, 0)),                  # b2
            pl.BlockSpec((9, 1, BP), lambda g: (0, 0, 0)),              # masks
        ],
        out_specs=pl.BlockSpec((1, outc, BP), lambda g: (g, 0, 0)),
    )

    out_g = pl.pallas_call(
        kernel,
        out_shape=jax.ShapeDtypeStruct((G, outc, BP), jnp.float32),
        grid_spec=grid_spec,
        compiler_params=pltpu.CompilerParams(
            dimension_semantics=("parallel",),
            vmem_limit_bytes=32 * 1024 * 1024),
    )(x_g, wcat, bcat, w1_flat, b1c, w2c, b2c, mask)

    out = (out_g.reshape(G, outc, B, Ppad)
           .transpose(0, 2, 1, 3)
           .reshape(N, outc, Ppad)[:, :, :P]
           .reshape(N, outc, H, W))
    return out


def resblock_ref(x, params):
    """Pure-JAX reference matching the PyTorch forward (NCHW, f32)."""
    wskip, bskip, w0, b0, w1, b1, w2, b2 = params
    dn = ('NCHW', 'OIHW', 'NCHW')

    def conv(inp, w, b, pad):
        y = lax.conv_general_dilated(inp, w, window_strides=(1, 1),
                                     padding=pad, dimension_numbers=dn)
        return y + b.reshape(1, -1, 1, 1)

    relu = lambda t: jnp.maximum(t, 0.0)
    skip = relu(conv(x, wskip[:, :, None, None], bskip, 'VALID'))
    r = relu(conv(x, w0[:, :, None, None], b0, 'VALID'))
    r = relu(conv(r, w1, b1, ((1, 1), (1, 1))))
    r = relu(conv(r, w2[:, :, None, None], b2, 'VALID'))
    return skip + r


def init_params(key, inc, outc):
    midc = outc // 2
    ks = jax.random.split(key, 8)
    s = 0.2
    wskip = s * jax.random.normal(ks[0], (outc, inc), jnp.float32)
    bskip = s * jax.random.normal(ks[1], (outc,), jnp.float32)
    w0 = s * jax.random.normal(ks[2], (midc, inc), jnp.float32)
    b0 = s * jax.random.normal(ks[3], (midc,), jnp.float32)
    w1 = s * jax.random.normal(ks[4], (midc, midc, 3, 3), jnp.float32)
    b1 = s * jax.random.normal(ks[5], (midc,), jnp.float32)
    w2 = s * jax.random.normal(ks[6], (outc, midc), jnp.float32)
    b2 = s * jax.random.normal(ks[7], (outc,), jnp.float32)
    return (wskip, bskip, w0, b0, w1, b1, w2, b2)


if __name__ == "__main__":
    N, INC, OUTC, H, W = 2, 4, 8, 16, 16
    key = jax.random.PRNGKey(0)
    kx, kp = jax.random.split(key)
    x = jax.random.normal(kx, (N, INC, H, W), jnp.float32)
    params = init_params(kp, INC, OUTC)

    out = jax.block_until_ready(resblock_pallas(x, params))
    ref = jax.block_until_ready(resblock_ref(x, params))

    # bf16 matmul operands -> loosened tolerances (elementwise tail is f32).
    np.testing.assert_allclose(np.asarray(out), np.asarray(ref),
                               rtol=2e-2, atol=3e-2)
    print("KERNEL_OK")
</pallas_src>

<mosaic_0001>
module attributes {stable_mosaic.version = 11 : i64} {
  func.func @_resblock_kernel(%arg0: i32, %arg1: memref<1x4x512xbf16, #tpu.memory_space<vmem>>, %arg2: memref<12x4xbf16, #tpu.memory_space<vmem>>, %arg3: memref<12x1xf32, #tpu.memory_space<vmem>>, %arg4: memref<4x36xbf16, #tpu.memory_space<vmem>>, %arg5: memref<4x1xf32, #tpu.memory_space<vmem>>, %arg6: memref<8x4xbf16, #tpu.memory_space<vmem>>, %arg7: memref<8x1xf32, #tpu.memory_space<vmem>>, %arg8: memref<9x1x512xf32, #tpu.memory_space<vmem>>, %arg9: memref<1x8x512xf32, #tpu.memory_space<vmem>>) attributes {dimension_semantics = [#tpu.dimension_semantics<parallel>], iteration_bounds = array<i64: 1>, scalar_prefetch = 0 : i64, scratch_operands = 0 : i64, tpu.core_type = #tpu.core_type<tc>, window_params = [{transform_indices = @transform_0, window_bounds = array<i64: 1, 4, 512>}, {pipeline_mode = #tpu.pipeline_mode<synchronous>, transform_indices = @transform_1, window_bounds = array<i64: 12, 4>}, {pipeline_mode = #tpu.pipeline_mode<synchronous>, transform_indices = @transform_2, window_bounds = array<i64: 12, 1>}, {pipeline_mode = #tpu.pipeline_mode<synchronous>, transform_indices = @transform_3, window_bounds = array<i64: 4, 36>}, {pipeline_mode = #tpu.pipeline_mode<synchronous>, transform_indices = @transform_4, window_bounds = array<i64: 4, 1>}, {pipeline_mode = #tpu.pipeline_mode<synchronous>, transform_indices = @transform_5, window_bounds = array<i64: 8, 4>}, {pipeline_mode = #tpu.pipeline_mode<synchronous>, transform_indices = @transform_6, window_bounds = array<i64: 8, 1>}, {pipeline_mode = #tpu.pipeline_mode<synchronous>, transform_indices = @transform_7, window_bounds = array<i64: 9, 1, 512>}, {transform_indices = @transform_8, window_bounds = array<i64: 1, 8, 512>}]} {
    %c0 = arith.constant 0 : index
    %c0_0 = arith.constant 0 : index
    %c0_1 = arith.constant 0 : index
    %0 = vector.load %arg1[%c0, %c0_0, %c0_1] : memref<1x4x512xbf16, #tpu.memory_space<vmem>>, vector<1x4x512xbf16>
    %1 = vector.shape_cast %0 : vector<1x4x512xbf16> to vector<4x512xbf16>
    %c0_2 = arith.constant 0 : index
    %c0_3 = arith.constant 0 : index
    %2 = vector.load %arg2[%c0_2, %c0_3] : memref<12x4xbf16, #tpu.memory_space<vmem>>, vector<12x4xbf16>
    %cst = arith.constant dense<0.000000e+00> : vector<12x512xf32>
    %3 = tpu.matmul %2, %1, %cst {dimension_numbers = #tpu.dot_dimension_numbers<[1], [0], [0], [1], [0, 0, 1, 1], [], []>} : vector<12x4xbf16>, vector<4x512xbf16>, vector<12x512xf32> -> vector<12x512xf32>
    %c0_4 = arith.constant 0 : index
    %c0_5 = arith.constant 0 : index
    %4 = vector.load %arg3[%c0_4, %c0_5] : memref<12x1xf32, #tpu.memory_space<vmem>>, vector<12x1xf32>
    %5 = vector.broadcast %4 : vector<12x1xf32> to vector<12x512xf32>
    %6 = arith.addf %3, %5 : vector<12x512xf32>
    %cst_6 = arith.constant 0.000000e+00 : f32
    %7 = vector.broadcast %cst_6 : f32 to vector<12x512xf32>
    %8 = arith.maximumf %6, %7 : vector<12x512xf32>
    %9 = vector.extract_strided_slice %8 {offsets = [0, 0], sizes = [8, 512], strides = [1, 1]} : vector<12x512xf32> to vector<8x512xf32>
    %10 = vector.extract_strided_slice %8 {offsets = [8, 0], sizes = [4, 512], strides = [1, 1]} : vector<12x512xf32> to vector<4x512xf32>
    %c17_i32 = arith.constant 17 : i32
    %11 = tpu.dynamic_rotate %10 by %c17_i32 dim 1 : vector<4x512xf32>, i32 -> vector<4x512xf32>
    %c0_7 = arith.constant 0 : index
    %c0_8 = arith.constant 0 : index
    %c0_9 = arith.constant 0 : index
    %12 = vector.load %arg8[%c0_7, %c0_8, %c0_9] : memref<9x1x512xf32, #tpu.memory_space<vmem>>, vector<1x1x512xf32>
    %13 = vector.shape_cast %12 : vector<1x1x512xf32> to vector<1x512xf32>
    %14 = vector.broadcast %13 : vector<1x512xf32> to vector<4x512xf32>
    %15 = arith.mulf %11, %14 : vector<4x512xf32>
    %c16_i32 = arith.constant 16 : i32
    %16 = tpu.dynamic_rotate %10 by %c16_i32 dim 1 : vector<4x512xf32>, i32 -> vector<4x512xf32>
    %c1 = arith.constant 1 : index
    %c0_10 = arith.constant 0 : index
    %c0_11 = arith.constant 0 : index
    %17 = vector.load %arg8[%c1, %c0_10, %c0_11] : memref<9x1x512xf32, #tpu.memory_space<vmem>>, vector<1x1x512xf32>
    %18 = vector.shape_cast %17 : vector<1x1x512xf32> to vector<1x512xf32>
    %19 = vector.broadcast %18 : vector<1x512xf32> to vector<4x512xf32>
    %20 = arith.mulf %16, %19 : vector<4x512xf32>
    %c15_i32 = arith.constant 15 : i32
    %21 = tpu.dynamic_rotate %10 by %c15_i32 dim 1 : vector<4x512xf32>, i32 -> vector<4x512xf32>
    %c2 = arith.constant 2 : index
    %c0_12 = arith.constant 0 : index
    %c0_13 = arith.constant 0 : index
    %22 = vector.load %arg8[%c2, %c0_12, %c0_13] : memref<9x1x512xf32, #tpu.memory_space<vmem>>, vector<1x1x512xf32>
    %23 = vector.shape_cast %22 : vector<1x1x512xf32> to vector<1x512xf32>
    %24 = vector.broadcast %23 : vector<1x512xf32> to vector<4x512xf32>
    %25 = arith.mulf %21, %24 : vector<4x512xf32>
    %c1_i32 = arith.constant 1 : i32
    %26 = tpu.dynamic_rotate %10 by %c1_i32 dim 1 : vector<4x512xf32>, i32 -> vector<4x512xf32>
    %c3 = arith.constant 3 : index
    %c0_14 = arith.constant 0 : index
    %c0_15 = arith.constant 0 : index
    %27 = vector.load %arg8[%c3, %c0_14, %c0_15] : memref<9x1x512xf32, #tpu.memory_space<vmem>>, vector<1x1x512xf32>
    %28 = vector.shape_cast %27 : vector<1x1x512xf32> to vector<1x512xf32>
    %29 = vector.broadcast %28 : vector<1x512xf32> to vector<4x512xf32>
    %30 = arith.mulf %26, %29 : vector<4x512xf32>
    %c4 = arith.constant 4 : index
    %c0_16 = arith.constant 0 : index
    %c0_17 = arith.constant 0 : index
    %31 = vector.load %arg8[%c4, %c0_16, %c0_17] : memref<9x1x512xf32, #tpu.memory_space<vmem>>, vector<1x1x512xf32>
    %32 = vector.shape_cast %31 : vector<1x1x512xf32> to vector<1x512xf32>
    %33 = vector.broadcast %32 : vector<1x512xf32> to vector<4x512xf32>
    %34 = arith.mulf %10, %33 : vector<4x512xf32>
    %c511_i32 = arith.constant 511 : i32
    %35 = tpu.dynamic_rotate %10 by %c511_i32 dim 1 : vector<4x512xf32>, i32 -> vector<4x512xf32>
    %c5 = arith.constant 5 : index
    %c0_18 = arith.constant 0 : index
    %c0_19 = arith.constant 0 : index
    %36 = vector.load %arg8[%c5, %c0_18, %c0_19] : memref<9x1x512xf32, #tpu.memory_space<vmem>>, vector<1x1x512xf32>
    %37 = vector.shape_cast %36 : vector<1x1x512xf32> to vector<1x512xf32>
    %38 = vector.broadcast %37 : vector<1x512xf32> to vector<4x512xf32>
    %39 = arith.mulf %35, %38 : vector<4x512xf32>
    %c497_i32 = arith.constant 497 : i32
    %40 = tpu.dynamic_rotate %10 by %c497_i32 dim 1 : vector<4x512xf32>, i32 -> vector<4x512xf32>
    %c6 = arith.constant 6 : index
    %c0_20 = arith.constant 0 : index
    %c0_21 = arith.constant 0 : index
    %41 = vector.load %arg8[%c6, %c0_20, %c0_21] : memref<9x1x512xf32, #tpu.memory_space<vmem>>, vector<1x1x512xf32>
    %42 = vector.shape_cast %41 : vector<1x1x512xf32> to vector<1x512xf32>
    %43 = vector.broadcast %42 : vector<1x512xf32> to vector<4x512xf32>
    %44 = arith.mulf %40, %43 : vector<4x512xf32>
    %c496_i32 = arith.constant 496 : i32
    %45 = tpu.dynamic_rotate %10 by %c496_i32 dim 1 : vector<4x512xf32>, i32 -> vector<4x512xf32>
    %c7 = arith.constant 7 : index
    %c0_22 = arith.constant 0 : index
    %c0_23 = arith.constant 0 : index
    %46 = vector.load %arg8[%c7, %c0_22, %c0_23] : memref<9x1x512xf32, #tpu.memory_space<vmem>>, vector<1x1x512xf32>
    %47 = vector.shape_cast %46 : vector<1x1x512xf32> to vector<1x512xf32>
    %48 = vector.broadcast %47 : vector<1x512xf32> to vector<4x512xf32>
    %49 = arith.mulf %45, %48 : vector<4x512xf32>
    %c495_i32 = arith.constant 495 : i32
    %50 = tpu.dynamic_rotate %10 by %c495_i32 dim 1 : vector<4x512xf32>, i32 -> vector<4x512xf32>
    %c8 = arith.constant 8 : index
    %c0_24 = arith.constant 0 : index
    %c0_25 = arith.constant 0 : index
    %51 = vector.load %arg8[%c8, %c0_24, %c0_25] : memref<9x1x512xf32, #tpu.memory_space<vmem>>, vector<1x1x512xf32>
    %52 = vector.shape_cast %51 : vector<1x1x512xf32> to vector<1x512xf32>
    %53 = vector.broadcast %52 : vector<1x512xf32> to vector<4x512xf32>
    %54 = arith.mulf %50, %53 : vector<4x512xf32>
    %55 = tpu.concatenate %15, %20, %25, %30, %34, %39, %44, %49, %54 in 0 : vector<4x512xf32>, vector<4x512xf32>, vector<4x512xf32>, vector<4x512xf32>, vector<4x512xf32>, vector<4x512xf32>, vector<4x512xf32>, vector<4x512xf32>, vector<4x512xf32> -> vector<36x512xf32>
    %56 = arith.truncf %55 : vector<36x512xf32> to vector<36x512xbf16>
    %c0_26 = arith.constant 0 : index
    %c0_27 = arith.constant 0 : index
    %57 = vector.load %arg4[%c0_26, %c0_27] : memref<4x36xbf16, #tpu.memory_space<vmem>>, vector<4x36xbf16>
    %cst_28 = arith.constant dense<0.000000e+00> : vector<4x512xf32>
    %58 = tpu.matmul %57, %56, %cst_28 {dimension_numbers = #tpu.dot_dimension_numbers<[1], [0], [0], [1], [0, 0, 1, 1], [], []>} : vector<4x36xbf16>, vector<36x512xbf16>, vector<4x512xf32> -> vector<4x512xf32>
    %c0_29 = arith.constant 0 : index
    %c0_30 = arith.constant 0 : index
    %59 = vector.load %arg5[%c0_29, %c0_30] : memref<4x1xf32, #tpu.memory_space<vmem>>, vector<4x1xf32>
    %60 = vector.broadcast %59 : vector<4x1xf32> to vector<4x512xf32>
    %61 = arith.addf %58, %60 : vector<4x512xf32>
    %cst_31 = arith.constant 0.000000e+00 : f32
    %62 = vector.broadcast %cst_31 : f32 to vector<4x512xf32>
    %63 = arith.maximumf %61, %62 : vector<4x512xf32>
    %c0_32 = arith.constant 0 : index
    %c0_33 = arith.constant 0 : index
    %64 = vector.load %arg6[%c0_32, %c0_33] : memref<8x4xbf16, #tpu.memory_space<vmem>>, vector<8x4xbf16>
    %65 = arith.truncf %63 : vector<4x512xf32> to vector<4x512xbf16>
    %cst_34 = arith.constant dense<0.000000e+00> : vector<8x512xf32>
    %66 = tpu.matmul %64, %65, %cst_34 {dimension_numbers = #tpu.dot_dimension_numbers<[1], [0], [0], [1], [0, 0, 1, 1], [], []>} : vector<8x4xbf16>, vector<4x512xbf16>, vector<8x512xf32> -> vector<8x512xf32>
    %c0_35 = arith.constant 0 : index
    %c0_36 = arith.constant 0 : index
    %67 = vector.load %arg7[%c0_35, %c0_36] : memref<8x1xf32, #tpu.memory_space<vmem>>, vector<8x1xf32>
    %68 = vector.broadcast %67 : vector<8x1xf32> to vector<8x512xf32>
    %69 = arith.addf %66, %68 : vector<8x512xf32>
    %cst_37 = arith.constant 0.000000e+00 : f32
    %70 = vector.broadcast %cst_37 : f32 to vector<8x512xf32>
    %71 = arith.maximumf %69, %70 : vector<8x512xf32>
    %72 = arith.addf %9, %71 : vector<8x512xf32>
    %c0_38 = arith.constant 0 : index
    %c0_39 = arith.constant 0 : index
    %c0_40 = arith.constant 0 : index
    %73 = vector.load %arg9[%c0_38, %c0_39, %c0_40] : memref<1x8x512xf32, #tpu.memory_space<vmem>>, vector<1x8x512xf32>
    %74 = vector.shape_cast %73 : vector<1x8x512xf32> to vector<8x512xf32>
    %75 = vector.shape_cast %72 : vector<8x512xf32> to vector<1x8x512xf32>
    tpu.vector_store %arg9[%c0_38, %c0_39, %c0_40], %75 {strides = array<i32>} : memref<1x8x512xf32, #tpu.memory_space<vmem>>, vector<1x8x512xf32>,
    return
  }
  func.func @transform_0(%arg0: i32) -> (i32, i32, i32) {
    %c0_i32 = arith.constant 0 : i32
    %c0_i32_0 = arith.constant 0 : i32
    %c0_i32_1 = arith.constant 0 : i32
    return %arg0, %c0_i32, %c0_i32_0 : i32, i32, i32
  }
  func.func @transform_1(%arg0: i32) -> (i32, i32) {
    %c0_i32 = arith.constant 0 : i32
    %c0_i32_0 = arith.constant 0 : i32
    %c0_i32_1 = arith.constant 0 : i32
    return %c0_i32, %c0_i32_0 : i32, i32
  }
  func.func @transform_2(%arg0: i32) -> (i32, i32) {
    %c0_i32 = arith.constant 0 : i32
    %c0_i32_0 = arith.constant 0 : i32
    %c0_i32_1 = arith.constant 0 : i32
    return %c0_i32, %c0_i32_0 : i32, i32
  }
  func.func @transform_3(%arg0: i32) -> (i32, i32) {
    %c0_i32 = arith.constant 0 : i32
    %c0_i32_0 = arith.constant 0 : i32
    %c0_i32_1 = arith.constant 0 : i32
    return %c0_i32, %c0_i32_0 : i32, i32
  }
  func.func @transform_4(%arg0: i32) -> (i32, i32) {
    %c0_i32 = arith.constant 0 : i32
    %c0_i32_0 = arith.constant 0 : i32
    %c0_i32_1 = arith.constant 0 : i32
    return %c0_i32, %c0_i32_0 : i32, i32
  }
  func.func @transform_5(%arg0: i32) -> (i32, i32) {
    %c0_i32 = arith.constant 0 : i32
    %c0_i32_0 = arith.constant 0 : i32
    %c0_i32_1 = arith.constant 0 : i32
    return %c0_i32, %c0_i32_0 : i32, i32
  }
  func.func @transform_6(%arg0: i32) -> (i32, i32) {
    %c0_i32 = arith.constant 0 : i32
    %c0_i32_0 = arith.constant 0 : i32
    %c0_i32_1 = arith.constant 0 : i32
    return %c0_i32, %c0_i32_0 : i32, i32
  }
  func.func @transform_7(%arg0: i32) -> (i32, i32, i32) {
    %c0_i32 = arith.constant 0 : i32
    %c0_i32_0 = arith.constant 0 : i32
    %c0_i32_1 = arith.constant 0 : i32
    %c0_i32_2 = arith.constant 0 : i32
    return %c0_i32, %c0_i32_0, %c0_i32_1 : i32, i32, i32
  }
  func.func @transform_8(%arg0: i32) -> (i32, i32, i32) {
    %c0_i32 = arith.constant 0 : i32
    %c0_i32_0 = arith.constant 0 : i32
    %c0_i32_1 = arith.constant 0 : i32
    return %arg0, %c0_i32, %c0_i32_0 : i32, i32, i32
  }
}

</mosaic_0001>

<bundles_post_ra>
// kernel: tpu_custom_call.1
= control target key start
LH: loop header
LB: loop body
LE: loop exit
PB: predicated region body
PF: predicated region fallthrough
CT: control target
= control target key end

     0   :  { %v56_v1 = vlaneseq  ;;  %v906_v2 = vmov 1983009808   ;;  %v907_v4 = vmov 0   ;;  %s1248_s0 = inlined_call_operand.vmem [shape: bf16[1,4,512], index: 0, kind: input, shape index: {}]   ;;  %s1249_s1 = inlined_call_operand.vmem [shape: bf16[12,4], index: 1, kind: input, shape index: {}]   ;;  %s1250_s2 = inlined_call_operand.vmem [shape: f32[12,1], index: 2, kind: input, shape index: {}]   ;;  %s1251_s3 = inlined_call_operand.vmem [shape: bf16[4,36], index: 3, kind: input, shape index: {}]   ;;  %s1252_s4 = inlined_call_operand.vmem [shape: f32[4,1], index: 4, kind: input, shape index: {}]   ;;  %s1253_s5 = inlined_call_operand.vmem [shape: bf16[8,4], index: 5, kind: input, shape index: {}]   ;;  %s1254_s6 = inlined_call_operand.vmem [shape: f32[8,1], index: 6, kind: input, shape index: {}]   ;;  %s1255_s7 = inlined_call_operand.vmem [shape: f32[9,1,512], index: 7, kind: input, shape index: {}]   ;;  %s1256_s8 = inlined_call_operand.hbm [shape: f32[1,8,512], index: 8, kind: output, shape index: {}]  }
   0x1   :  { %v31_v0 = vld [vmem:[%s1248_s0] sm:$0xff]  ;;  %v54_v3 = vunpack.c.l.s4 %v906_v2  ;;  %118 = vmatprep.mubr.bf16.mxu0 %v907_v4  ;;  %161 = vmatprep.mubr.bf16.mxu1 %v907_v4  ;;  %v35_v6 = vld [vmem:[%s1250_s2 + $0x8] sm:$0xf] }
   0x2   :  { %v57_v5 = vshrl.u32 %v56_v1, 7  ;;  %880 = vset.pattern.permute.xlu0 %v907_v4  ;;  %881 = vset.pattern.permute.xlu1 %v907_v4  ;;  %v52_v8 = vcombine.high %v31_v0, %v31_v0 }
   0x3   :  { %v55_v7 = vunpack.c.0.s8 %v54_v3  ;;  %43 = vperm.xlu0 %880, %v35_v6  }
   0x4   :  { %13 = vsyncpa [#allocation3], 0  ;;  %vm73_vm0 = vcmask 1041408   ;;  %v883_v16 = vld [vmem:[%s1249_s1] sm:$0x3f]   ;;  %vm69_vm1 = vcmask 31744  }
   0x5   :  { %v58_v9 = vsub.s32 %v55_v7, %v57_v5  ;;  %v988_v19 = vsub.s32 0, %v57_v5  ;;  %v990_v20 = vsub.s32 2, %v57_v5  ;;  %v992_v22 = vsub.s32 3, %v57_v5  ;;  %v856_v25 = vld [vmem:[%s1255_s7 + $0x10] sm:$0xf]  ;;  %s908_s11 = smov 111  }
   0x6   :  { %v1001_v26 = vsub.s32 1, %v57_v5  ;;  %s909_s12 = smov 127   ;;  %s910_s13 = smov 112   ;;  %v34_v47 = vld [vmem:[%s1250_s2] sm:$0xff]  ;;  %v1029_v50 = vand.u32 127, %v56_v1  ;;  %vm576_vm4 = vcmask 1043456  }
   0x7   :  { %v59_v10 = vrot.slane %v31_v0, %v58_v9  ;;  %v66_v11 = vrot.slane %v52_v8, %v58_v9  ;;  %v347_v31 = vrot.slane %v856_v25, %v988_v19  ;;  %v355_v32 = vrot.slane %v856_v25, %v990_v20  ;;  %s911_s14 = smov 113   ;;  %s912_s15 = smov 16   ;;  %v606_v48 = vld [vmem:[%s1252_s4] sm:$0xf]  ;;  %v857_v56 = vld [vmem:[%s1255_s7 + $0x14] sm:$0xf] }
   0x8   :  { %v359_v35 = vrot.slane %v856_v25, %v992_v22  ;;  %v351_v40 = vrot.slane %v856_v25, %v1001_v26  ;;  %s913_s16 = smov 1   ;;  %s914_s17 = smov 17   ;;  %v719_v49 = vld [vmem:[%s1254_s6] sm:$0xff]  ;;  %vm496_vm2 = vcmp.lt.s32.totalorder %v1029_v50, 111  ;;  %vm376_vm3 = vcmp.lt.s32.totalorder %v1029_v50, 127 }
   0x9   :  { %v67_v12 = vcombine.high %v59_v10, %v59_v10  ;;  %v68_v13 = vcombine.high %v66_v11, %v66_v11  ;;  %v75_v14 = vsel %vm73_vm0, %v59_v10, 0  ;;  %v81_v15 = vsel %vm73_vm0, %v66_v11, 0  ;;  %s915_s18 = smov 15   ;;  %v1034_v51 = vld [vmem:[%s1255_s7 + $0x20] sm:$0xf] }
   0xa   :  { %v515_v54 = vrot.slane %v1034_v51, %v990_v20  ;;  %v519_v55 = vrot.slane %v1034_v51, %v992_v22  ;;  %v387_v63 = vrot.slane %v857_v56, %v988_v19  ;;  %v391_v0 = vrot.slane %v857_v56, %v1001_v26 }
   0xb   :  { %849 = vmatprep.subr.msk.bf16.mxu0 %vm73_vm0, %v67_v12  ;;  %851 = vmatprep.subr.msk.bf16.mxu1 %vm73_vm0, %v68_v13  ;;  %v395_v8 = vrot.slane %v857_v56, %v990_v20  ;;  %v399_v12 = vrot.slane %v857_v56, %v992_v22  ;;  %v859_v13 = vld [vmem:[%s1255_s7 + $0x1c] sm:$0xf]  ;;  %vm456_vm5 = vcmp.lt.s32.totalorder %v1029_v50, 112  ;;  %vm416_vm6 = vcmp.lt.s32.totalorder %v1029_v50, 113 }
   0xc   :  { %101 = vmatpush1.bf16.msra.mxu0 %v75_v14  ;;  %144 = vmatpush1.bf16.msra.mxu1 %v81_v15  ;;  %vm229_vm7 = vcmp.lt.s32.totalorder %v1029_v50, 16  ;;  %vm309_vm8 = vcmp.lt.s32.totalorder %v1029_v50, 1  ;;  %vm190_vm9 = vcmp.lt.s32.totalorder %v1029_v50, 17  ;;  %vm269_vm10 = vcmp.lt.s32.totalorder %v1029_v50, 15 }
   0xd   :  { %vm612_vm11 = vcmask 293888  }
   0xf   :  { %850 = vmatmul.mubr.msk.bf16.vlgmr.msra.gmra.mxu0 %vm69_vm1, %v883_v16  ;;  %852 = vmatmul.mubr.msk.bf16.vlgmr.msra.gmra.mxu1 %vm69_vm1, %v883_v16 }
  0x10   :  { %660 = vmatprep.mubr.bf16.mxu0 %v907_v4  ;;  %701 = vmatprep.mubr.bf16.mxu1 %v907_v4 }
  0x7e   :  { %v44_v21 = vpop.permute.xlu0 %43 }
  0xcf   :  { %v984_v17 = vpop.f32.mrf.mxu0  ;;  %v986_v18 = vpop.f32.mrf.mxu1 }
  0xd1   :  { %v994_v23 = vpop.f32.mrf.mxu0  ;;  %v996_v24 = vpop.f32.mrf.mxu1 }
  0xd3   :  { %v124_v27 = vpop.f32.mrf.mxu0  ;;  %v167_v28 = vpop.f32.mrf.mxu1 }
  0xd4   :  { %v125_v29 = vadd.f32 %v124_v27, %v44_v21  ;;  %v168_v30 = vadd.f32 %v167_v28, %v44_v21  ;;  %v467_v28 = vrot.slane %v859_v13, %v988_v19 }
  0xd5   :  { %v126_v33 = vpop.f32.mrf.mxu0  ;;  %v169_v34 = vpop.f32.mrf.mxu1 }
  0xd6   :  { %v176_v36 = vmax.f32 %v125_v29, 0.0  ;;  %v178_v37 = vmax.f32 %v168_v30, 0.0  ;;  %v127_v38 = vadd.f32 %v126_v33, %v44_v21  ;;  %v170_v39 = vadd.f32 %v169_v34, %v44_v21 }
  0xd7   :  { %v471_v29 = vrot.slane %v859_v13, %v1001_v26 }
  0xd8   :  { %v177_v41 = vmax.f32 %v127_v38, 0.0  ;;  %v179_v42 = vmax.f32 %v170_v39, 0.0  ;;  %488 = vrot.lane.b32.xlu0 %v176_v36, %s908_s11  ;;  %492 = vrot.lane.b32.xlu1 %v178_v37, %s908_s11  ;;  %v1009_v43 = vmul.f32 %v347_v31, %v176_v36  ;;  %v1011_v44 = vmul.f32 %v355_v32, %v178_v37 }
  0xda   :  { %v1013_v45 = vmul.f32 %v359_v35, %v179_v42  ;;  %v1015_v46 = vmul.f32 %v351_v40, %v177_v41  ;;  %v475_v40 = vrot.slane %v859_v13, %v990_v20 }
  0xdc   :  { %494 = vrot.lane.b32.xlu0 %v179_v42, %s908_s11  ;;  %368 = vrot.lane.b32.xlu1 %v176_v36, %s909_s12 }
  0xe0   :  { %370 = vrot.lane.b32.xlu0 %v177_v41, %s909_s12  ;;  %372 = vrot.lane.b32.xlu1 %v178_v37, %s909_s12 }
  0xe4   :  { %374 = vrot.lane.b32.xlu0 %v179_v42, %s909_s12  ;;  %448 = vrot.lane.b32.xlu1 %v176_v36, %s910_s13 }
  0xe8   :  { %450 = vrot.lane.b32.xlu0 %v177_v41, %s910_s13  ;;  %452 = vrot.lane.b32.xlu1 %v178_v37, %s910_s13 }
  0xec   :  { %454 = vrot.lane.b32.xlu0 %v179_v42, %s910_s13  ;;  %408 = vrot.lane.b32.xlu1 %v176_v36, %s911_s14 }
  0xf0   :  { %410 = vrot.lane.b32.xlu0 %v177_v41, %s911_s14  ;;  %412 = vrot.lane.b32.xlu1 %v178_v37, %s911_s14 }
  0xf4   :  { %414 = vrot.lane.b32.xlu0 %v179_v42, %s911_s14  ;;  %221 = vrot.lane.b32.xlu1 %v176_v36, %s912_s15 }
  0xf8   :  { %223 = vrot.lane.b32.xlu0 %v177_v41, %s912_s15  ;;  %225 = vrot.lane.b32.xlu1 %v178_v37, %s912_s15 }
  0xfc   :  { %227 = vrot.lane.b32.xlu0 %v179_v42, %s912_s15  ;;  %301 = vrot.lane.b32.xlu1 %v176_v36, %s913_s16 }
 0x100   :  { %303 = vrot.lane.b32.xlu0 %v177_v41, %s913_s16  ;;  %305 = vrot.lane.b32.xlu1 %v178_v37, %s913_s16 }
 0x104   :  { %307 = vrot.lane.b32.xlu0 %v179_v42, %s913_s16  ;;  %180 = vrot.lane.b32.xlu1 %v176_v36, %s914_s17 }
 0x108   :  { %182 = vrot.lane.b32.xlu0 %v177_v41, %s914_s17  ;;  %184 = vrot.lane.b32.xlu1 %v178_v37, %s914_s17 }
 0x10c   :  { %186 = vrot.lane.b32.xlu0 %v179_v42, %s914_s17  ;;  %490 = vrot.lane.b32.xlu1 %v177_v41, %s908_s11 }
 0x110   :  { %263 = vrot.lane.b32.xlu0 %v177_v41, %s915_s18  ;;  %261 = vrot.lane.b32.xlu1 %v176_v36, %s915_s18  ;;  %v479_v41 = vrot.slane %v859_v13, %v992_v22 }
 0x114   :  { %267 = vrot.lane.b32.xlu0 %v179_v42, %s915_s18  ;;  %265 = vrot.lane.b32.xlu1 %v178_v37, %s915_s18 }
 0x118   :  { %38 = vperm.xlu0 %880, %v34_v47   ;;  %609 = vperm.xlu1 %881, %v606_v48   ;;  %v858_v48 = vld [vmem:[%s1255_s7 + $0x18] sm:$0xf] }
 0x11c   :  { %722 = vperm.xlu1 %881, %v719_v49  }
 0x14a   :  { %v1036_v52 = vpop.permute.xlu0 %488  ;;  %v1038_v53 = vpop.permute.xlu1 %492 }
 0x14e   :  { %v495_v57 = vpop.permute.xlu0 %494  ;;  %v369_v58 = vpop.permute.xlu1 %368 }
 0x14f   :  { %v497_v59 = vsel %vm496_vm2, %v1038_v53, %v495_v57  ;;  %v500_v60 = vsel %vm496_vm2, %v495_v57, %v1036_v52 }
 0x150   :  { %v526_v61 = vmul.f32 %v515_v54, %v497_v59  ;;  %v527_v62 = vmul.f32 %v519_v55, %v500_v60 }
 0x152   :  { %v603_v1 = vpack.c.bf16 %v526_v61, %v526_v61  ;;  %v604_v2 = vpack.c.bf16 %v527_v62, %v527_v62  ;;  %v371_v3 = vpop.permute.xlu0 %370  ;;  %v373_v5 = vpop.permute.xlu1 %372 }
 0x153   :  { %v379_v6 = vsel %vm376_vm3, %v369_v58, %v371_v3  ;;  %v378_v7 = vsel %vm376_vm3, %v371_v3, %v373_v5 }
 0x154   :  { %v404_v9 = vmul.f32 %v387_v63, %v379_v6  ;;  %v405_v10 = vmul.f32 %v391_v0, %v378_v7  ;;  %863 = vmatprep.subr.msk.bf16.mxu1 %vm73_vm0, %v604_v2  ;;  %v623_v11 = vsel %vm73_vm0, %v603_v1, 0  ;;  %v435_v63 = vrot.slane %v858_v48, %v990_v20  ;;  %v853_v1 = vld [vmem:[%s1255_s7 + $0x4] sm:$0xf] }
 0x155   :  { %680 = vmatpush1.bf16.msra.mxu1 %v623_v11  ;;  %v439_v0 = vrot.slane %v858_v48, %v992_v22  ;;  %v248_v11 = vrot.slane %v853_v1, %v990_v20 }
 0x156   :  { %v556_v14 = vrot.slane %v404_v9, 4  ;;  %v557_v15 = vrot.slane %v405_v10, 4  ;;  %v375_v16 = vpop.permute.xlu0 %374  ;;  %v449_v21 = vpop.permute.xlu1 %448  ;;  %v244_v10 = vrot.slane %v853_v1, %v1001_v26 }
 0x157   :  { %v377_v25 = vsel %vm376_vm3, %v373_v5, %v375_v16  ;;  %v380_v27 = vsel %vm376_vm3, %v375_v16, %v369_v58  ;;  %v427_v58 = vrot.slane %v858_v48, %v988_v19 }
 0x158   :  { %v1077_v30 = vsel %vm576_vm4, %v1009_v43, %v556_v14  ;;  %v406_v31 = vmul.f32 %v395_v8, %v377_v25  ;;  %v407_v32 = vmul.f32 %v399_v12, %v380_v27  ;;  %v1081_v33 = vsel %vm576_vm4, %v1015_v46, %v557_v15 }
 0x15a   :  { %v558_v34 = vrot.slane %v406_v31, 4  ;;  %v559_v35 = vrot.slane %v407_v32, 4  ;;  %v451_v36 = vpop.permute.xlu0 %450  ;;  %v453_v37 = vpop.permute.xlu1 %452 }
 0x15b   :  { %v459_v38 = vsel %vm456_vm5, %v449_v21, %v451_v36  ;;  %v458_v39 = vsel %vm456_vm5, %v451_v36, %v453_v37 }
 0x15c   :  { %v587_v42 = vsel %vm576_vm4, %v1011_v44, %v558_v34  ;;  %v484_v43 = vmul.f32 %v467_v28, %v459_v38  ;;  %v485_v46 = vmul.f32 %v471_v29, %v458_v39  ;;  %v588_v47 = vsel %vm576_vm4, %v1013_v45, %v559_v35 }
 0x15d   :  { %v431_v45 = vrot.slane %v858_v48, %v1001_v26 }
 0x15e   :  { %v455_v49 = vpop.permute.xlu0 %454  ;;  %v409_v54 = vpop.permute.xlu1 %408  ;;  %v568_v2 = vrot.slane %v484_v43, 4  ;;  %v569_v3 = vrot.slane %v485_v46, 4  ;;  %v252_v43 = vrot.slane %v853_v1, %v992_v22  ;;  %v855_v46 = vld [vmem:[%s1255_s7 + $0xc] sm:$0xf] }
 0x15f   :  { %v457_v55 = vsel %vm456_vm5, %v453_v37, %v455_v49  ;;  %v460_v56 = vsel %vm456_vm5, %v455_v49, %v449_v21 }
 0x160   :  { %v486_v44 = vmul.f32 %v475_v40, %v457_v55  ;;  %v487_v57 = vmul.f32 %v479_v41, %v460_v56  ;;  %v240_v41 = vrot.slane %v853_v1, %v988_v19  ;;  %v324_v56 = vrot.slane %v855_v46, %v1001_v26 }
 0x162   :  { %v411_v59 = vpop.permute.xlu0 %410  ;;  %v413_v60 = vpop.permute.xlu1 %412  ;;  %v570_v21 = vrot.slane %v486_v44, 4  ;;  %v571_v25 = vrot.slane %v487_v57, 4  ;;  %v328_v44 = vrot.slane %v855_v46, %v990_v20 }
 0x163   :  { %v419_v61 = vsel %vm416_vm6, %v409_v54, %v411_v59  ;;  %v418_v62 = vsel %vm416_vm6, %v411_v59, %v413_v60 }
 0x164   :  { %v444_v5 = vmul.f32 %v427_v58, %v419_v61  ;;  %v445_v6 = vmul.f32 %v431_v45, %v418_v62  ;;  %v320_v62 = vrot.slane %v855_v46, %v988_v19 }
 0x166   :  { %v1114_v7 = vsel %vm576_vm4, %v444_v5, %v568_v2  ;;  %v415_v8 = vpop.permute.xlu0 %414  ;;  %v222_v9 = vpop.permute.xlu1 %221  ;;  %v1119_v12 = vsel %vm576_vm4, %v445_v6, %v569_v3 }
 0x167   :  { %v417_v13 = vsel %vm416_vm6, %v413_v60, %v415_v8  ;;  %v420_v14 = vsel %vm416_vm6, %v415_v8, %v409_v54  ;;  %v598_v15 = vpack.c.bf16 %v1119_v12, %v1081_v33  ;;  %v597_v16 = vpack.c.bf16 %v1114_v7, %v1077_v30 }
 0x168   :  { %v446_v27 = vmul.f32 %v435_v63, %v417_v13  ;;  %v447_v28 = vmul.f32 %v439_v0, %v420_v14  ;;  %v332_v63 = vrot.slane %v855_v46, %v992_v22  ;;  %v195_v0 = vld [vmem:[%s1255_s7] sm:$0xf] }
 0x169   :  { %v200_v14 = vrot.slane %v195_v0, %v988_v19 }
 0x16a   :  { %v591_v29 = vsel %vm576_vm4, %v446_v27, %v570_v21  ;;  %v224_v31 = vpop.permute.xlu0 %223  ;;  %v226_v32 = vpop.permute.xlu1 %225  ;;  %v592_v34 = vsel %vm576_vm4, %v447_v28, %v571_v25  ;;  %v212_v21 = vrot.slane %v195_v0, %v992_v22  ;;  %v854_v25 = vld [vmem:[%s1255_s7 + $0x8] sm:$0xf] }
 0x16b   :  { %v232_v35 = vsel %vm229_vm7, %v222_v9, %v224_v31  ;;  %v231_v36 = vsel %vm229_vm7, %v224_v31, %v226_v32  ;;  %v600_v37 = vpack.c.bf16 %v592_v34, %v588_v47  ;;  %v599_v38 = vpack.c.bf16 %v591_v29, %v587_v42 }
 0x16c   :  { %v258_v39 = vmul.f32 %v244_v10, %v232_v35  ;;  %v259_v40 = vmul.f32 %v248_v11, %v231_v36  ;;  %v208_v10 = vrot.slane %v195_v0, %v990_v20  ;;  %v507_v29 = vrot.slane %v1034_v51, %v988_v19 }
 0x16d   :  { %681 = vmatprep.subr.bf16.mxu1 %v600_v37  ;;  %v511_v31 = vrot.slane %v1034_v51, %v1001_v26  ;;  %v284_v37 = vrot.slane %v854_v25, %v1001_v26 }
 0x16e   :  { %v228_v48 = vpop.permute.xlu0 %227  ;;  %v302_v49 = vpop.permute.xlu1 %301  ;;  %682 = vmatpush1.bf16.msra.mxu1 %v599_v38  ;;  %v534_v34 = vrot.slane %v259_v40, 4 }
 0x16f   :  { %v230_v54 = vsel %vm229_vm7, %v226_v32, %v228_v48  ;;  %v233_v42 = vsel %vm229_vm7, %v228_v48, %v222_v9  ;;  %v204_v9 = vrot.slane %v195_v0, %v1001_v26  ;;  %v533_v32 = vrot.slane %v258_v39, 4 }
 0x170   :  { %v257_v47 = vmul.f32 %v240_v41, %v233_v42  ;;  %v260_v55 = vmul.f32 %v252_v43, %v230_v54 }
 0x172   :  { %v304_v57 = vpop.permute.xlu0 %303  ;;  %v306_v58 = vpop.permute.xlu1 %305  ;;  %v532_v38 = vrot.slane %v257_v47, 4  ;;  %v535_v41 = vrot.slane %v260_v55, 4 }
 0x173   :  { %v312_v45 = vsel %vm309_vm8, %v302_v49, %v304_v57  ;;  %v311_v59 = vsel %vm309_vm8, %v304_v57, %v306_v58 }
 0x174   :  { %v1151_v60 = vmul.f32 %v324_v56, %v312_v45  ;;  %v1153_v61 = vmul.f32 %v328_v44, %v311_v59 }
 0x176   :  { %v308_v1 = vpop.permute.xlu0 %307  ;;  %v181_v2 = vpop.permute.xlu1 %180 }
 0x177   :  { %v310_v3 = vsel %vm309_vm8, %v306_v58, %v308_v1  ;;  %v313_v5 = vsel %vm309_vm8, %v308_v1, %v302_v49 }
 0x178   :  { %v1165_v6 = vmul.f32 %v320_v62, %v313_v5  ;;  %v1167_v8 = vmul.f32 %v332_v63, %v310_v3  ;;  %v288_v63 = vrot.slane %v854_v25, %v990_v20  ;;  %v546_v3 = vrot.slane %v1153_v61, 4 }
 0x17a   :  { %v183_v11 = vpop.permute.xlu0 %182  ;;  %v185_v13 = vpop.permute.xlu1 %184  ;;  %v544_v5 = vrot.slane %v1165_v6, 4  ;;  %v547_v6 = vrot.slane %v1167_v8, 4  ;;  %v605_v8 = vld [vmem:[%s1251_s3] sm:$0x3] }
 0x17b   :  { %v193_v27 = vsel %vm190_vm9, %v181_v2, %v183_v11  ;;  %v192_v28 = vsel %vm190_vm9, %v183_v11, %v185_v13 }
 0x17c   :  { %v218_v35 = vmul.f32 %v204_v9, %v193_v27  ;;  %v219_v36 = vmul.f32 %v208_v10, %v192_v28 }
 0x17e   :  { %v579_v43 = vsel %vm576_vm4, %v219_v36, %v534_v34  ;;  %v187_v46 = vpop.permute.xlu0 %186  ;;  %v491_v48 = vpop.permute.xlu1 %490  ;;  %v578_v49 = vsel %vm576_vm4, %v218_v35, %v533_v32 }
 0x17f   :  { %v191_v54 = vsel %vm190_vm9, %v185_v13, %v187_v46  ;;  %v194_v51 = vsel %vm190_vm9, %v187_v46, %v181_v2  ;;  %v498_v39 = vsel %vm496_vm2, %v491_v48, %v1038_v53  ;;  %v499_v26 = vsel %vm496_vm2, %v1036_v52, %v491_v48 }
 0x180   :  { %v217_v40 = vmul.f32 %v200_v14, %v194_v51  ;;  %v220_v42 = vmul.f32 %v212_v21, %v191_v54  ;;  %v524_v47 = vmul.f32 %v507_v29, %v499_v26  ;;  %v525_v55 = vmul.f32 %v511_v31, %v498_v39 }
 0x181   :  { %v280_v53 = vrot.slane %v854_v25, %v988_v19  ;;  %v545_v52 = vrot.slane %v1151_v60, 4  ;;  %v292_v2 = vrot.slane %v854_v25, %v992_v22 }
 0x182   :  { %v577_v56 = vsel %vm576_vm4, %v217_v40, %v532_v38  ;;  %v601_v44 = vpack.c.bf16 %v524_v47, %v524_v47  ;;  %v602_v57 = vpack.c.bf16 %v525_v55, %v525_v55  ;;  %v264_v58 = vpop.permute.xlu0 %263  ;;  %v262_v45 = vpop.permute.xlu1 %261  ;;  %v580_v59 = vsel %vm576_vm4, %v220_v42, %v535_v41  ;;  %v714_v40 = vld [vmem:[%s1253_s5] sm:$0xf]  ;;  %s916_s5 = smov [#allocation2]  }
 0x183   :  { %v272_v62 = vsel %vm269_vm10, %v262_v45, %v264_v58  ;;  %s840_s16 = sshll.u32 %s916_s5, 4  ;;  %s841_s16 = int_to_ptr.vmem [resolvable:$true] %s840_s16 }
 0x184   :  { %v298_v0 = vmul.f32 %v284_v37, %v272_v62  ;;  %861 = vmatprep.subr.msk.bf16.mxu0 %vm73_vm0, %v602_v57  ;;  %v617_v1 = vsel %vm73_vm0, %v601_v44, 0  ;;  %s884_s17 = scalar_lea.vmem %s841_s16, 512  ;;  %p889_p1 = scmp.lt.s32.totalorder %s841_s16, %s841_s16 }
 0x185   :  { %639 = vmatpush1.bf16.msra.mxu0 %v617_v1  ;;  %p885_p0 = scmp.ne.s32.totalorder %s841_s16, %s884_s17  ;;  %p890_p2 = scmp.lt.s32.totalorder %s884_s17, %s884_s17 }
 0x186   :  { %v268_v9 = vpop.permute.xlu0 %267  ;;  %640 = vmatprep.subr.bf16.mxu0 %v598_v15  ;;  %v266_v19 = vpop.permute.xlu1 %265  ;;  %v582_v20 = vsel %vm576_vm4, %v298_v0, %v545_v52 }
 0x187   :  { %v273_v60 = vsel %vm269_vm10, %v268_v9, %v262_v45  ;;  %v270_v10 = vsel %vm269_vm10, %v266_v19, %v268_v9  ;;  %v271_v22 = vsel %vm269_vm10, %v264_v58, %v266_v19  ;;  %v594_v61 = vpack.c.bf16 %v582_v20, %v578_v49  ;;  %p891_p3 = por %p890_p2, %p889_p1 }
 0x188   :  { %v297_v11 = vmul.f32 %v280_v53, %v273_v60  ;;  %v299_v13 = vmul.f32 %v288_v63, %v271_v22  ;;  %v300_v14 = vmul.f32 %v292_v2, %v270_v10 }
 0x189   :  { %641 = vmatpush1.bf16.msra.mxu0 %v597_v16  ;;  %p892_p4 = pnand %p891_p3, %p885_p0 }
 0x18a   :  { %v581_v33 = vsel %vm576_vm4, %v297_v11, %v544_v5  ;;  %v583_v12 = vsel %vm576_vm4, %v299_v13, %v546_v3  ;;  %642 = vmatprep.subr.bf16.mxu0 %v594_v61  ;;  %v584_v15 = vsel %vm576_vm4, %v300_v14, %v547_v6 }
 0x18b   :  { %v593_v21 = vpack.c.bf16 %v581_v33, %v577_v56  ;;  %v596_v50 = vpack.c.bf16 %v584_v15, %v580_v59  ;;  %v595_v25 = vpack.c.bf16 %v583_v12, %v579_v43 }
 0x18d   :  { %643 = vmatpush1.bf16.msra.mxu0 %v593_v21  ;;  %683 = vmatprep.subr.bf16.mxu1 %v596_v50 }
 0x18e   :  { %684 = vmatpush1.bf16.msra.mxu1 %v595_v25 }
 0x190   :  { %862 = vmatmul.mubr.msk.bf16.vlgmr.msra.gmra.mxu0 %vm612_vm11, %v605_v8 }
 0x191   :  { %864 = vmatmul.mubr.msk.bf16.vlgmr.msra.gmra.mxu1 %vm612_vm11, %v605_v8  ;;  %772 = vmatprep.mubr.bf16.mxu0 %v907_v4 }
 0x192   :  { %813 = vmatprep.mubr.bf16.mxu1 %v907_v4 }
 0x193   :  { %v610_v30 = vpop.permute.xlu1 %609  ;;  %v39_v42 = vpop.permute.xlu0 %38 }
 0x194   :  { %v121_v47 = vadd.f32 %v984_v17, %v39_v42  ;;  %v164_v55 = vadd.f32 %v986_v18, %v39_v42  ;;  %v123_v57 = vadd.f32 %v994_v23, %v39_v42  ;;  %v166_v59 = vadd.f32 %v996_v24, %v39_v42 }
 0x196   :  { %v172_v63 = vmax.f32 %v121_v47, 0.0  ;;  %v174_v2 = vmax.f32 %v164_v55, 0.0  ;;  %v173_v9 = vmax.f32 %v123_v57, 0.0  ;;  %v175_v23 = vmax.f32 %v166_v59, 0.0 }
 0x197   :  { %v723_v56 = vpop.permute.xlu1 %722 }
 0x250   :  { %v662_v7 = vpop.f32.mrf.mxu0 }
 0x251   :  { %v663_v16 = vadd.f32 %v662_v7, %v610_v30  ;;  %v703_v27 = vpop.f32.mrf.mxu1 }
 0x252   :  { %v704_v28 = vadd.f32 %v703_v27, %v610_v30  ;;  %v664_v29 = vpop.f32.mrf.mxu0 }
 0x253   :  { %v710_v31 = vmax.f32 %v663_v16, 0.0  ;;  %v665_v32 = vadd.f32 %v664_v29, %v610_v30  ;;  %v705_v34 = vpop.f32.mrf.mxu1 }
 0x254   :  { %v712_v35 = vmax.f32 %v704_v28, 0.0  ;;  %v706_v36 = vadd.f32 %v705_v34, %v610_v30  ;;  %v666_v37 = vpop.f32.mrf.mxu0 }
 0x255   :  { %v715_v38 = vpack.c.bf16 %v710_v31, %v710_v31  ;;  %v711_v41 = vmax.f32 %v665_v32, 0.0  ;;  %v707_v43 = vpop.f32.mrf.mxu1 }
 0x256   :  { %v717_v46 = vpack.c.bf16 %v712_v35, %v712_v35  ;;  %v713_v48 = vmax.f32 %v706_v36, 0.0  ;;  %v667_v49 = vpop.f32.mrf.mxu0 }
 0x257   :  { %v716_v54 = vpack.c.bf16 %v711_v41, %v711_v41  ;;  %v708_v4 = vpop.f32.mrf.mxu1  ;;  %v729_v51 = vsel %vm73_vm0, %v715_v38, 0 }
 0x258   :  { %v718_v39 = vpack.c.bf16 %v713_v48, %v713_v48  ;;  %v735_v26 = vsel %vm73_vm0, %v717_v46, 0 }
 0x259   :  { %865 = vmatprep.subr.msk.bf16.mxu0 %vm73_vm0, %v716_v54 }
 0x25a   :  { %755 = vmatpush1.bf16.msra.mxu0 %v729_v51  ;;  %867 = vmatprep.subr.msk.bf16.mxu1 %vm73_vm0, %v718_v39 }
 0x25b   :  { %796 = vmatpush1.bf16.msra.mxu1 %v735_v26 }
 0x25d   :  { %866 = vmatmul.mubr.msk.bf16.vlgmr.msra.gmra.mxu0 %vm69_vm1, %v714_v40 }
 0x25e   :  { %868 = vmatmul.mubr.msk.bf16.vlgmr.msra.gmra.mxu1 %vm69_vm1, %v714_v40 }
 0x31d   :  { %v774_v44 = vpop.f32.mrf.mxu0 }
 0x31e   :  { %v775_v58 = vadd.f32 %v774_v44, %v723_v56  ;;  %v815_v45 = vpop.f32.mrf.mxu1 }
 0x31f   :  { %v816_v62 = vadd.f32 %v815_v45, %v723_v56  ;;  %v776_v53 = vpop.f32.mrf.mxu0 }
 0x320   :  { %v822_v52 = vmax.f32 %v775_v58, 0.0  ;;  %v777_v0 = vadd.f32 %v776_v53, %v723_v56  ;;  %v817_v1 = vpop.f32.mrf.mxu1 }
 0x321   :  { %v824_v3 = vmax.f32 %v816_v62, 0.0  ;;  %v818_v5 = vadd.f32 %v817_v1, %v723_v56  ;;  %v778_v17 = vpop.f32.mrf.mxu0 }
 0x322   :  { %v826_v18 = vadd.f32 %v822_v52, %v172_v63  ;;  %v823_v19 = vmax.f32 %v777_v0, 0.0  ;;  %v819_v20 = vpop.f32.mrf.mxu1 }
 0x323   :  { %v828_v60 = vadd.f32 %v824_v3, %v174_v2  ;;  %v825_v10 = vmax.f32 %v818_v5, 0.0  ;;  %v779_v24 = vpop.f32.mrf.mxu0 }
 0x324   :  { %830 = vst [vmem:[#allocation2] sm:$0xff] %v826_v18  ;;  %v827_v22 = vadd.f32 %v823_v19, %v173_v9  ;;  %v820_v61 = vpop.f32.mrf.mxu1 }
 0x325   :  { %832 = vst [vmem:[#allocation2 + $0x10] sm:$0xff] %v828_v60  ;;  %v829_v6 = vadd.f32 %v825_v10, %v175_v23 }
 0x326   :  { %831 = vst [vmem:[#allocation2 + $0x8] sm:$0xff] %v827_v22 }
 0x327   :  { %833 = vst [vmem:[#allocation2 + $0x18] sm:$0xff] %v829_v6 }
 0x328   :  { %895 = shalt.err (!%p892_p4)
}
 0x329   :  { %843 = dma.vmem_to_hbm [thread:$0]  %s841_s16, 512, %s1256_s8, [#allocation3]  }
 0x32a   :  { %904 = dma.done.wait [#allocation3], 512  }
 0x32b   :  { %905 = vsyncadd [#allocation3], 4294966784 }
 0x32c   :  { %847 = vsyncpa [#allocation3], 1 }

</bundles_post_ra>
